<compile_context>
chip_gen: v7x
topology: tpu7x:2x2x1
jax: 0.10.0
libtpu: 0.0.40
codegen_flags: <defaults>
</compile_context>

<pallas_src>
import functools

import numpy as np
import jax
import jax.numpy as jnp
from jax.experimental import pallas as pl
from jax.experimental.pallas import tpu as pltpu

_LANES = 128
_SUBLANES = 8
# v7x has 2 TensorCores per chip; an extra "parallel" slice is a no-op on the
# single-TC v5e/v6e (it just runs sequentially on the one core).
_NUM_CORES = 2
# 6144 rows * 128 lanes * 4 B = 3 MiB/tile -> 2 inputs x 2 buffers x 3 MiB =
# 12 MiB of double-buffered inputs: below v5e's 16 MiB scoped-VMEM default and
# far below the v6e/v7x budgets.
_MAX_TILE_ROWS = 6144


def _masked_mse_kernel(yp_ref, yt_ref, out_ref):
    # yp_ref / yt_ref: (tile_rows, 128) tiles of the gathered, zero-padded slab.
    # out_ref: (8, 128) f32 partial-sum block for this core; doubles as the
    # accumulator (output BlockSpec returns the same block across the inner
    # reduction axis, so it stays VMEM-resident).
    @pl.when(pl.program_id(1) == 0)
    def _():
        out_ref[...] = jnp.zeros_like(out_ref)

    d = yp_ref[...].astype(jnp.float32) - yt_ref[...].astype(jnp.float32)
    # Fold the whole tile into a single (8, 128) vreg with elementwise VALU
    # adds only (the reshape splits whole vregs off the sublane axis -- no
    # cross-lane/XLU work in the hot path).
    out_ref[...] += jnp.sum((d * d).reshape(-1, _SUBLANES, _LANES), axis=0)


@functools.partial(jax.jit, static_argnames=("tile_rows",))
def masked_mse_pallas(y_pred, y_true, mask_idx, *, tile_rows=2048):
    """y_pred, y_true: (B, F, C) real arrays. mask_idx: (n_samples,) int indices into F."""
    B, F, C = y_pred.shape
    n_samples = int(mask_idx.shape[0])
    total = B * n_samples * C
    inv_count = 1.0 / float(total)

    # Gather only the masked frequency bins (reads just the selected bins; the
    # jit around this wrapper lets XLA fuse gather -> pad -> reshape into a
    # single producer so the slab is written to HBM exactly once).
    yp = jnp.take(y_pred, mask_idx.astype(jnp.int32), axis=1)
    yt = jnp.take(y_true, mask_idx.astype(jnp.int32), axis=1)

    # Flatten + zero-pad to a lane-dense (rows, 128) layout; zero padding on
    # both operands contributes 0 to the sum of squared differences.
    rows = pl.cdiv(total, _LANES)
    rows = pl.cdiv(rows, _SUBLANES) * _SUBLANES
    tr = pl.cdiv(max(int(tile_rows), _SUBLANES), _SUBLANES) * _SUBLANES
    tr = min(tr, _MAX_TILE_ROWS, rows)
    # Round rows so the tiles split evenly across the parallel core slices.
    rows = pl.cdiv(rows, tr * _NUM_CORES) * (tr * _NUM_CORES)
    n_tiles = rows // tr
    n_inner = n_tiles // _NUM_CORES
    padded = rows * _LANES

    yp2 = jnp.pad(yp.reshape(-1), (0, padded - total)).reshape(rows, _LANES)
    yt2 = jnp.pad(yt.reshape(-1), (0, padded - total)).reshape(rows, _LANES)

    partials = pl.pallas_call(
        _masked_mse_kernel,
        out_shape=jax.ShapeDtypeStruct((_NUM_CORES * _SUBLANES, _LANES), jnp.float32),
        grid_spec=pltpu.PrefetchScalarGridSpec(
            num_scalar_prefetch=0,
            grid=(_NUM_CORES, n_inner),
            in_specs=[
                pl.BlockSpec((tr, _LANES), lambda c, i: (c * n_inner + i, 0)),
                pl.BlockSpec((tr, _LANES), lambda c, i: (c * n_inner + i, 0)),
            ],
            out_specs=pl.BlockSpec((_SUBLANES, _LANES), lambda c, i: (c, 0)),
        ),
        compiler_params=pltpu.CompilerParams(
            dimension_semantics=("parallel", "arbitrary")),
    )(yp2, yt2)

    # Tiny final cross-lane reduction (NUM_CORES*8 x 128 f32) stays in XLA.
    return jnp.sum(partials) * jnp.float32(inv_count)


class MaskedMSELoss:
    """Mirrors masked_mse_loss.__init__/forward; the forward math runs in Pallas."""

    def __init__(self, nfft, n_samples, n_sets=1, regenerate_mask=True, seed=0):
        self.nfft = nfft
        self.n_samples = n_samples
        self.n_sets = n_sets
        self.regenerate_mask = regenerate_mask
        self._key = jax.random.PRNGKey(seed)
        self.mask_indices = self._generate_partitions()
        self.i = -1

    def _generate_partitions(self):
        # TODO(synk): stand-in for flamo's generate_partitions(); random
        # permutation of the frequency bins split into n_sets partitions of
        # n_samples indices (host-side JAX, not a Pallas op).
        self._key, sub = jax.random.split(self._key)
        F = self.nfft // 2 + 1
        perm = jax.random.permutation(sub, F)
        return perm[: self.n_sets * self.n_samples].reshape(
            self.n_sets, self.n_samples).astype(jnp.int32)

    def __call__(self, y_pred, y_true):
        self.i += 1
        if self.i >= self.mask_indices.shape[0]:
            self.i = 0
            if self.regenerate_mask:
                self.mask_indices = self._generate_partitions()
        mask = self.mask_indices[self.i]
        return masked_mse_pallas(y_pred, y_true, mask)


if __name__ == "__main__":
    # Small shapes consistent with the module: nfft=64 -> F = 33 freq bins.
    nfft = 64
    F = nfft // 2 + 1
    B, C = 4, 16
    n_samples, n_sets = 8, 2

    key = jax.random.PRNGKey(0)
    k1, k2 = jax.random.split(key)
    y_pred = jax.random.normal(k1, (B, F, C), dtype=jnp.float32)
    y_true = jax.random.normal(k2, (B, F, C), dtype=jnp.float32)

    loss_fn = MaskedMSELoss(nfft=nfft, n_samples=n_samples, n_sets=n_sets, seed=0)
    loss = loss_fn(y_pred, y_true)
    loss = jax.block_until_ready(loss)

    # Reference (plain JAX) for the same mask that was just consumed.
    mask = loss_fn.mask_indices[loss_fn.i]
    ref = jnp.mean((y_pred[:, mask] - y_true[:, mask]) ** 2)
    np.testing.assert_allclose(np.asarray(loss), np.asarray(ref), rtol=1e-5, atol=1e-6)

    print("KERNEL_OK")
</pallas_src>

<mosaic_0001>
module attributes {stable_mosaic.version = 11 : i64} {
  func.func @_masked_mse_kernel(%arg0: i32, %arg1: i32, %arg2: memref<8x128xf32, #tpu.memory_space<vmem>>, %arg3: memref<8x128xf32, #tpu.memory_space<vmem>>, %arg4: memref<8x128xf32, #tpu.memory_space<vmem>>) attributes {dimension_semantics = [#tpu.dimension_semantics<parallel>, #tpu.dimension_semantics<arbitrary>], iteration_bounds = array<i64: 2, 1>, scalar_prefetch = 0 : i64, scratch_operands = 0 : i64, tpu.core_type = #tpu.core_type<tc>, window_params = [{transform_indices = @transform_0, window_bounds = array<i64: 8, 128>}, {transform_indices = @transform_1, window_bounds = array<i64: 8, 128>}, {transform_indices = @transform_2, window_bounds = array<i64: 8, 128>}]} {
    %c0_i32 = arith.constant 0 : i32
    %0 = arith.cmpi eq, %arg1, %c0_i32 : i32
    %1 = arith.extui %0 : i1 to i32
    %c0_i32_0 = arith.constant 0 : i32
    %2 = arith.cmpi ne, %1, %c0_i32_0 : i32
    scf.if %2 {
      %cst_8 = arith.constant 0.000000e+00 : f32
      %12 = vector.broadcast %cst_8 : f32 to vector<8x128xf32>
      %c0_9 = arith.constant 0 : index
      %c0_10 = arith.constant 0 : index
      %13 = vector.load %arg4[%c0_9, %c0_10] : memref<8x128xf32, #tpu.memory_space<vmem>>, vector<8x128xf32>
      tpu.vector_store %arg4[%c0_9, %c0_10], %12 {strides = array<i32>} : memref<8x128xf32, #tpu.memory_space<vmem>>, vector<8x128xf32>,
    } else {
    }
    %c0 = arith.constant 0 : index
    %c0_1 = arith.constant 0 : index
    %3 = vector.load %arg2[%c0, %c0_1] : memref<8x128xf32, #tpu.memory_space<vmem>>, vector<8x128xf32>
    %c0_2 = arith.constant 0 : index
    %c0_3 = arith.constant 0 : index
    %4 = vector.load %arg3[%c0_2, %c0_3] : memref<8x128xf32, #tpu.memory_space<vmem>>, vector<8x128xf32>
    %5 = arith.subf %3, %4 : vector<8x128xf32>
    %c0_4 = arith.constant 0 : index
    %c0_5 = arith.constant 0 : index
    %6 = vector.load %arg4[%c0_4, %c0_5] : memref<8x128xf32, #tpu.memory_space<vmem>>, vector<8x128xf32>
    %7 = arith.mulf %5, %5 : vector<8x128xf32>
    %8 = vector.shape_cast %7 : vector<8x128xf32> to vector<1x8x128xf32>
    %cst = arith.constant dense<0.000000e+00> : vector<8x128xf32>
    %9 = vector.multi_reduction <add>, %8, %cst [0] : vector<1x8x128xf32> to vector<8x128xf32>
    %10 = arith.addf %6, %9 : vector<8x128xf32>
    %c0_6 = arith.constant 0 : index
    %c0_7 = arith.constant 0 : index
    %11 = vector.load %arg4[%c0_6, %c0_7] : memref<8x128xf32, #tpu.memory_space<vmem>>, vector<8x128xf32>
    tpu.vector_store %arg4[%c0_6, %c0_7], %10 {strides = array<i32>} : memref<8x128xf32, #tpu.memory_space<vmem>>, vector<8x128xf32>,
    return
  }
  func.func @transform_0(%arg0: i32, %arg1: i32) -> (i32, i32) {
    %c1_i32 = arith.constant 1 : i32
    %0 = arith.muli %arg0, %c1_i32 : i32
    %1 = arith.addi %0, %arg1 : i32
    %c0_i32 = arith.constant 0 : i32
    %c0_i32_0 = arith.constant 0 : i32
    return %1, %c0_i32 : i32, i32
  }
  func.func @transform_1(%arg0: i32, %arg1: i32) -> (i32, i32) {
    %c1_i32 = arith.constant 1 : i32
    %0 = arith.muli %arg0, %c1_i32 : i32
    %1 = arith.addi %0, %arg1 : i32
    %c0_i32 = arith.constant 0 : i32
    %c0_i32_0 = arith.constant 0 : i32
    return %1, %c0_i32 : i32, i32
  }
  func.func @transform_2(%arg0: i32, %arg1: i32) -> (i32, i32) {
    %c0_i32 = arith.constant 0 : i32
    %c0_i32_0 = arith.constant 0 : i32
    return %arg0, %c0_i32 : i32, i32
  }
}

</mosaic_0001>

<bundles_post_ra>
// kernel: masked_mse_pallas.1
= control target key start
LH: loop header
LB: loop body
LE: loop exit
PB: predicated region body
PF: predicated region fallthrough
CT: control target
= control target key end

     0   :  { %s342_s9 = smov 0   ;;  %s344_s10 = smov 0   ;;  %s366_s0 = inlined_call_operand.vmem [shape: f32[16,128], index: 0, kind: input, shape index: {}]   ;;  %s367_s1 = inlined_call_operand.vmem [shape: f32[16,128], index: 1, kind: input, shape index: {}]   ;;  %s368_s2 = inlined_call_operand.vmem [shape: f32[16,128], index: 2, kind: output, shape index: {}]  }
   0x1   :  { %s346_s11 = smov 0  }
   0x2 LB: > { %s24_s12 = sadd.s32 1, %s321_s10  ;;  %p272_p0 = scmp.ge.s32.totalorder %s325_s11, 1  ;;  %s325_s11 = sphi %s346_s11, %s12_s11   ;;  %s321_s10 = sphi %s344_s10, %s370_s10   ;;  %s317_s9 = sphi %s342_s9, %s369_s9  }
   0x3   : > { %p26_p1 = scmp.ge.s32.totalorder %s24_s12, 2  ;;  %p140_p2 = scmp.lt.s32.totalorder %s325_s11, 3 }
   0x5   : > { %s372_s12 = smov (%p26_p1, %s24_s12), 0  ;;  %p141_p3 = pnand %p272_p0, %p140_p2 }
   0x6   : > { %p167_p4 = scmp.lt.s32.totalorder (!%p141_p3), %s317_s9, 1 }
   0x7   : > { %144 = sbr.rel (%p141_p3) target bundleno = 24 (0x18), region = 28 }
   0xe   : > { %s374_s9 = smov (!%p167_p4, %s317_s9), 1 }
   0xf   : > { %s273_s13 = sshll.u32 %s374_s9, 3 }
  0x10   : > { %s170_s16 = scalar_lea.vmem %s366_s0, %s273_s13  ;;  %s176_s19 = scalar_lea.vmem %s367_s1, %s273_s13 }
  0x11   : > { %v187_v0 = vld [vmem:[%s170_s16] sm:$0xff]  ;;  %s181_s22 = scalar_lea.vmem %s368_s2, %s273_s13 }
  0x12   : > { %v188_v1 = vld [vmem:[%s176_s19] sm:$0xff] }
  0x13   : > { %v189_v2 = vsub.f32 %v187_v0, %v188_v1 }
  0x15   : > { %v191_v3 = vmul.f32 %v189_v2, %v189_v2 }
  0x17   : > { %194 = vst [vmem:[%s181_s22] sm:$0xff] %v191_v3 }
  0x18 PF: > { %s12_s11 = sadd.s32 1, %s325_s11   ;;  %s369_s9 = smov %s321_s10 }
  0x19   : > { %p9_p5 = scmp.ge.s32.totalorder %s12_s11, 4   ;;  %s370_s10 = smov %s372_s12 }
  0x1b   :  { %11 = sbr.rel (!%p9_p5) target bundleno = 2 (0x2), region = 65 }

</bundles_post_ra>
